<compile_context>
chip_gen: v5e
topology: v5e:2x2
jax: 0.10.0
libtpu: 0.0.40
codegen_flags: <defaults>
</compile_context>

<pallas_src>
import functools

import numpy as np

import jax
import jax.numpy as jnp
from jax.experimental import pallas as pl
from jax.experimental.pallas import tpu as pltpu


def _round_up(x: int, m: int) -> int:
    return (x + m - 1) // m * m


def _hw_config():
    """Generation-aware (vmem_limit_bytes, pipeline_budget_bytes, mxu_tile)."""
    vmem_phys = 128 * 1024 * 1024
    mxu_tile = 128
    try:
        kind = jax.devices()[0].device_kind.lower()
        if ("v6" in kind) or ("v7" in kind) or ("7x" in kind):
            mxu_tile = 256                     # 2 x 256x256 MXU on v6e / v7x
        if ("v7" in kind) or ("7x" in kind):
            vmem_phys = 64 * 1024 * 1024       # 64 MiB per TensorCore on v7x
    except Exception:
        pass
    try:
        cap = getattr(pltpu.get_tpu_info(), "vmem_capacity_bytes", None)
        if cap:
            vmem_phys = int(cap)
    except Exception:
        pass
    # Scoped-VMEM limit: the 16/32 MiB scoped defaults are artificial caps.
    vmem_limit = int(min(64 * 1024 * 1024,
                         max(vmem_phys - 16 * 1024 * 1024, 32 * 1024 * 1024)))
    # Budget for the double-buffered pipeline working set, below the limit.
    budget = max(vmem_limit - 16 * 1024 * 1024, 8 * 1024 * 1024)
    return vmem_limit, budget, mxu_tile


def _pick_tile_h(h_min, d_pad, tm, compute_bytes, out_bytes, budget_bytes, mxu_tile):
    """Largest 128-aligned output tile width whose pipelined footprint fits."""
    def footprint(th):
        x_b = tm * d_pad * compute_bytes
        w_b = d_pad * th * compute_bytes
        b_b = th * 4
        o_b = tm * th * out_bytes
        acc_b = tm * th * 4                 # f32 matmul accumulator (always)
        head = 2 * 1024 * 1024              # Mosaic internal scratch headroom
        return 2 * (x_b + w_b + b_b + o_b) + acc_b + head

    th = h_min
    while th > 128 and footprint(th) > budget_bytes:
        th -= 128
    th = max(128, th)
    # Prefer MXU-friendly (256-aligned) widths when H actually has to be tiled.
    if th < h_min and mxu_tile > 128 and th > mxu_tile:
        th -= th % mxu_tile
    return th


def _cat_linear_kernel(x_row_ref, w_cat_ref, valid_ref,
                       x_ref, w_ref, b_ref, o_ref, *, m_axis):
    # x_row_ref / w_cat_ref are only consumed by the index_maps (SMEM).
    del x_row_ref, w_cat_ref
    mi = pl.program_id(m_axis)
    valid = valid_ref[mi] > 0

    @pl.when(valid)
    def _():
        xb = x_ref[0] if len(x_ref.shape) == 3 else x_ref[...]
        acc = jnp.dot(xb, w_ref[0], preferred_element_type=jnp.float32)
        o_ref[...] = (acc + b_ref[0].astype(jnp.float32)).astype(o_ref.dtype)

    @pl.when(jnp.logical_not(valid))
    def _():
        # Padding-only tile: these rows are discarded by the wrapper.
        o_ref[...] = jnp.zeros_like(o_ref)


def category_specific_linear(x, cat_ids, W, b, *, block_m=None,
                             compute_dtype=jnp.bfloat16,
                             vmem_budget_bytes=None, vmem_limit_bytes=None):
    """result[i] = x[i] @ W[cat_ids[i]] + b[cat_ids[i]]  (bias broadcast over seq).

    compute_dtype=jnp.float32 matches the f32 PyTorch module; the bfloat16
    default trades ~1e-3 relative error for the MXU's native rate.
    """
    B, T, D = x.shape
    C, D_w, H = W.shape
    assert D_w == D and b.shape == (C, H) and cat_ids.shape == (B,)
    out_dtype = x.dtype
    out_bytes = np.dtype(out_dtype).itemsize
    compute_bytes = np.dtype(compute_dtype).itemsize
    cat_ids = cat_ids.astype(jnp.int32)

    limit_hw, budget_hw, mxu_tile = _hw_config()
    vmem_limit_bytes = limit_hw if vmem_limit_bytes is None else vmem_limit_bytes
    vmem_budget_bytes = budget_hw if vmem_budget_bytes is None else vmem_budget_bytes
    block_m = mxu_tile if block_m is None else block_m

    # ---- hardware-friendly padded sizes -------------------------------------
    t_pad = _round_up(T, 8)
    d_pad = _round_up(D, 128)
    h_min = _round_up(H, 128)

    # If one batch element already fills an MXU-sized M tile, gather x rows in
    # place via the index_map; otherwise pack batches into category-aligned tiles.
    pack = t_pad < 128

    order = jnp.argsort(cat_ids)          # batches in category-sorted order
    inv = jnp.argsort(order)              # original batch -> sorted position
    sorted_cats = cat_ids[order]

    if pack:
        gb = max(1, min(-(-block_m // t_pad), B))          # batches per M tile
        tm = gb * t_pad
        b_pad = ((B + C * (gb - 1)) // gb) * gb            # static worst case
        n_m = b_pad // gb
    else:
        gb, tm, b_pad, n_m = 1, t_pad, B, B

    th = _pick_tile_h(h_min, d_pad, tm, compute_bytes, out_bytes,
                      vmem_budget_bytes, mxu_tile)
    h_pad = _round_up(h_min, th)
    n_h = h_pad // th

    # ---- tile metadata + the x operand ---------------------------------------
    idx = jnp.arange(n_m, dtype=jnp.int32)
    if pack:
        counts = jnp.bincount(cat_ids, length=C).astype(jnp.int32)
        padded_counts = ((counts + gb - 1) // gb) * gb
        seg_start_pad = jnp.concatenate(
            [jnp.zeros((1,), jnp.int32),
             jnp.cumsum(padded_counts)[:-1].astype(jnp.int32)])
        seg_start = jnp.concatenate(
            [jnp.zeros((1,), jnp.int32), jnp.cumsum(counts)[:-1].astype(jnp.int32)])
        rank = jnp.arange(B, dtype=jnp.int32) - seg_start[sorted_cats]
        dest = seg_start_pad[sorted_cats] + rank           # padded slot per sorted batch

        seg_end_pad = jnp.cumsum(padded_counts).astype(jnp.int32)
        tile_start = idx * gb
        tile_cat = jnp.clip(jnp.searchsorted(seg_end_pad, tile_start, side="right"),
                            0, C - 1).astype(jnp.int32)
        # valid <=> the tile holds at least one real (non-padding) batch row
        tile_valid = (tile_start < seg_start_pad[tile_cat] + counts[tile_cat]
                      ).astype(jnp.int32)
        # Padding-only tiles alias the previous valid tile's blocks so their
        # x / W / bias DMAs are skipped (same block index as the prior grid step).
        alias = jnp.maximum(
            jax.lax.cummax(jnp.where(tile_valid > 0, idx, -1), axis=0), 0
        ).astype(jnp.int32)
        x_row = alias
        w_cat = tile_cat[alias]

        # Cast before the (smaller) pad + scatter into the category-aligned slab.
        x_sorted = jnp.pad(x[order].astype(compute_dtype),
                           ((0, 0), (0, t_pad - T), (0, d_pad - D)))
        x_arr = jnp.zeros((b_pad, t_pad, d_pad), compute_dtype).at[dest].set(x_sorted)
        x_arr = x_arr.reshape(b_pad * t_pad, d_pad)
        x_block = (tm, d_pad)
        x_map = lambda mi, hi, xr, wc, vl: (xr[mi], 0)
    else:
        # No packing: read x in place, gathered per tile through the index_map.
        x_row = order.astype(jnp.int32)
        w_cat = sorted_cats
        tile_valid = jnp.ones((n_m,), jnp.int32)
        x_arr = jnp.pad(x.astype(compute_dtype),
                        ((0, 0), (0, t_pad - T), (0, d_pad - D)))
        x_block = (1, t_pad, d_pad)
        x_map = lambda mi, hi, xr, wc, vl: (xr[mi], 0, 0)

    w_p = jnp.pad(W.astype(compute_dtype), ((0, 0), (0, d_pad - D), (0, h_pad - H)))
    b_p = jnp.pad(b.astype(jnp.float32), ((0, 0), (0, h_pad - H))).reshape(C, 1, h_pad)

    # ---- grid order: minimize HBM read traffic if H must be tiled ------------
    x_bytes = n_m * tm * d_pad * compute_bytes
    w_slab_bytes = d_pad * h_pad * compute_bytes
    h_outer = (n_h == 1) or (
        (n_h * x_bytes + C * w_slab_bytes) <= (x_bytes + n_m * w_slab_bytes))
    if h_outer:
        grid = (n_h, n_m)            # m innermost: W DMA deduped per category
        m_axis = 1
        wrap = lambda f: (lambda hi, mi, *refs: f(mi, hi, *refs))
        dims = ("parallel", "arbitrary") if n_h > 1 else ("parallel", "parallel")
    else:
        grid = (n_m, n_h)            # h innermost: x block resident across h
        m_axis = 0
        wrap = lambda f: (lambda mi, hi, *refs: f(mi, hi, *refs))
        dims = ("parallel", "arbitrary")

    grid_spec = pltpu.PrefetchScalarGridSpec(
        num_scalar_prefetch=3,       # x_row, w_cat, tile_valid -> SMEM
        grid=grid,
        in_specs=[
            pl.BlockSpec(x_block, wrap(x_map)),
            pl.BlockSpec((1, d_pad, th),
                         wrap(lambda mi, hi, xr, wc, vl: (wc[mi], 0, hi))),
            pl.BlockSpec((1, 1, th),
                         wrap(lambda mi, hi, xr, wc, vl: (wc[mi], 0, hi))),
        ],
        out_specs=pl.BlockSpec((tm, th),
                               wrap(lambda mi, hi, xr, wc, vl: (mi, hi))),
    )

    out2d = pl.pallas_call(
        functools.partial(_cat_linear_kernel, m_axis=m_axis),
        out_shape=jax.ShapeDtypeStruct((n_m * tm, h_pad), out_dtype),
        grid_spec=grid_spec,
        compiler_params=pltpu.CompilerParams(
            dimension_semantics=dims,
            vmem_limit_bytes=vmem_limit_bytes,
        ),
    )(x_row, w_cat, tile_valid, x_arr, w_p, b_p)

    # ---- unpad / un-permute (pure gather; no zeros + scatter pass) ------------
    if pack:
        out3 = out2d.reshape(b_pad, t_pad, h_pad)
        return out3[dest[inv], :T, :H]
    out3 = out2d.reshape(B, t_pad, h_pad)
    return out3[inv, :T, :H]


if __name__ == "__main__":
    # Small deterministic setup consistent with the module:
    #   num_categories=3, input_dim=32, hidden_dim=32, batch=2, seq=8
    num_categories, input_dim, hidden_dim = 3, 32, 32
    B, T = 2, 8

    key = jax.random.PRNGKey(0)
    k_w, k_x, k_c, k_x2, k_c2 = jax.random.split(key, 5)

    # Parameter init mirrors nn.Module.__init__: 0.02 * randn for W, zeros for b.
    W = 0.02 * jax.random.normal(
        k_w, (num_categories, input_dim, hidden_dim), dtype=jnp.float32)
    b = jnp.zeros((num_categories, hidden_dim), dtype=jnp.float32)

    def reference(x, cat_ids, W, b, rounded=True):
        if rounded:   # same bf16 operand rounding + f32 accumulation as the kernel
            x = x.astype(jnp.bfloat16).astype(jnp.float32)
            W = W.astype(jnp.bfloat16).astype(jnp.float32)
        return jnp.einsum("btd,bdh->bth", x, W[cat_ids],
                          precision=jax.lax.Precision.HIGHEST) + b[cat_ids][:, None, :]

    fn = jax.jit(category_specific_linear)

    # --- packed path (small T: batches fused into category-aligned M tiles) ----
    x = jax.random.normal(k_x, (B, T, input_dim), dtype=jnp.float32)
    cat_ids = jax.random.randint(k_c, (B,), 0, num_categories, dtype=jnp.int32)
    out = jax.block_until_ready(fn(x, cat_ids, W, b))
    assert out.shape == (B, T, hidden_dim)
    ref = reference(x, cat_ids, W, b)
    assert jnp.allclose(out, ref, atol=1e-4, rtol=1e-3), \
        float(jnp.max(jnp.abs(out - ref)))
    ref_f32 = reference(x, cat_ids, W, b, rounded=False)
    assert jnp.allclose(out, ref_f32, atol=2e-2, rtol=5e-2)   # bf16 operand rounding

    # --- in-place gather path (T >= 128: no pad/scatter packing of x) ----------
    T2 = 128
    x2 = jax.random.normal(k_x2, (B, T2, input_dim), dtype=jnp.float32)
    cat_ids2 = jax.random.randint(k_c2, (B,), 0, num_categories, dtype=jnp.int32)
    out2 = jax.block_until_ready(fn(x2, cat_ids2, W, b))
    assert out2.shape == (B, T2, hidden_dim)
    ref2 = reference(x2, cat_ids2, W, b)
    assert jnp.allclose(out2, ref2, atol=1e-4, rtol=1e-3), \
        float(jnp.max(jnp.abs(out2 - ref2)))

    print("KERNEL_OK")
</pallas_src>

<mosaic_0001>
module attributes {stable_mosaic.version = 11 : i64} {
  func.func @_cat_linear_kernel(%arg0: i32, %arg1: i32, %arg2: memref<2xi32, #tpu.memory_space<smem>>, %arg3: memref<2xi32, #tpu.memory_space<smem>>, %arg4: memref<2xi32, #tpu.memory_space<smem>>, %arg5: memref<16x128xbf16, #tpu.memory_space<vmem>>, %arg6: memref<1x128x128xbf16, #tpu.memory_space<vmem>>, %arg7: memref<1x1x128xf32, #tpu.memory_space<vmem>>, %arg8: memref<16x128xf32, #tpu.memory_space<vmem>>) attributes {dimension_semantics = [#tpu.dimension_semantics<parallel>, #tpu.dimension_semantics<parallel>], iteration_bounds = array<i64: 1, 2>, scalar_prefetch = 3 : i64, scratch_operands = 0 : i64, tpu.core_type = #tpu.core_type<tc>, window_params = [{transform_indices = @transform_0, window_bounds = array<i64: 16, 128>}, {transform_indices = @transform_1, window_bounds = array<i64: 1, 128, 128>}, {transform_indices = @transform_2, window_bounds = array<i64: 1, 1, 128>}, {transform_indices = @transform_3, window_bounds = array<i64: 16, 128>}]} {
    %0 = arith.index_cast %arg1 : i32 to index
    %1 = memref.load %arg4[%0] : memref<2xi32, #tpu.memory_space<smem>>
    %c0_i32 = arith.constant 0 : i32
    %2 = arith.cmpi sgt, %1, %c0_i32 : i32
    %3 = arith.extui %2 : i1 to i32
    %c0_i32_0 = arith.constant 0 : i32
    %4 = arith.cmpi ne, %3, %c0_i32_0 : i32
    scf.if %4 {
      %c0 = arith.constant 0 : index
      %c0_2 = arith.constant 0 : index
      %8 = vector.load %arg5[%c0, %c0_2] : memref<16x128xbf16, #tpu.memory_space<vmem>>, vector<16x128xbf16>
      %c0_3 = arith.constant 0 : index
      %c0_4 = arith.constant 0 : index
      %c0_5 = arith.constant 0 : index
      %9 = vector.load %arg6[%c0_3, %c0_4, %c0_5] : memref<1x128x128xbf16, #tpu.memory_space<vmem>>, vector<1x128x128xbf16>
      %10 = vector.shape_cast %9 : vector<1x128x128xbf16> to vector<128x128xbf16>
      %cst = arith.constant dense<0.000000e+00> : vector<16x128xf32>
      %11 = tpu.matmul %8, %10, %cst {dimension_numbers = #tpu.dot_dimension_numbers<[1], [0], [0], [1], [0, 0, 1, 1], [], []>} : vector<16x128xbf16>, vector<128x128xbf16>, vector<16x128xf32> -> vector<16x128xf32>
      %c0_6 = arith.constant 0 : index
      %c0_7 = arith.constant 0 : index
      %c0_8 = arith.constant 0 : index
      %12 = vector.load %arg7[%c0_6, %c0_7, %c0_8] : memref<1x1x128xf32, #tpu.memory_space<vmem>>, vector<1x1x128xf32>
      %13 = vector.shape_cast %12 : vector<1x1x128xf32> to vector<1x128xf32>
      %14 = vector.broadcast %13 : vector<1x128xf32> to vector<16x128xf32>
      %15 = arith.addf %11, %14 : vector<16x128xf32>
      %c0_9 = arith.constant 0 : index
      %c0_10 = arith.constant 0 : index
      %16 = vector.load %arg8[%c0_9, %c0_10] : memref<16x128xf32, #tpu.memory_space<vmem>>, vector<16x128xf32>
      tpu.vector_store %arg8[%c0_9, %c0_10], %15 {strides = array<i32>} : memref<16x128xf32, #tpu.memory_space<vmem>>, vector<16x128xf32>,
    } else {
    }
    %true = arith.constant true
    %5 = arith.xori %2, %true : i1
    %6 = arith.extui %5 : i1 to i32
    %c0_i32_1 = arith.constant 0 : i32
    %7 = arith.cmpi ne, %6, %c0_i32_1 : i32
    scf.if %7 {
      %cst = arith.constant 0.000000e+00 : f32
      %8 = vector.broadcast %cst : f32 to vector<16x128xf32>
      %c0 = arith.constant 0 : index
      %c0_2 = arith.constant 0 : index
      %9 = vector.load %arg8[%c0, %c0_2] : memref<16x128xf32, #tpu.memory_space<vmem>>, vector<16x128xf32>
      tpu.vector_store %arg8[%c0, %c0_2], %8 {strides = array<i32>} : memref<16x128xf32, #tpu.memory_space<vmem>>, vector<16x128xf32>,
    } else {
    }
    return
  }
  func.func @transform_0(%arg0: i32, %arg1: i32, %arg2: memref<2xi32, #tpu.memory_space<smem>>, %arg3: memref<2xi32, #tpu.memory_space<smem>>, %arg4: memref<2xi32, #tpu.memory_space<smem>>) -> (i32, i32) {
    %0 = arith.index_cast %arg1 : i32 to index
    %1 = memref.load %arg2[%0] : memref<2xi32, #tpu.memory_space<smem>>
    %c0_i32 = arith.constant 0 : i32
    %c0_i32_0 = arith.constant 0 : i32
    return %1, %c0_i32 : i32, i32
  }
  func.func @transform_1(%arg0: i32, %arg1: i32, %arg2: memref<2xi32, #tpu.memory_space<smem>>, %arg3: memref<2xi32, #tpu.memory_space<smem>>, %arg4: memref<2xi32, #tpu.memory_space<smem>>) -> (i32, i32, i32) {
    %0 = arith.index_cast %arg1 : i32 to index
    %1 = memref.load %arg3[%0] : memref<2xi32, #tpu.memory_space<smem>>
    %c0_i32 = arith.constant 0 : i32
    %c0_i32_0 = arith.constant 0 : i32
    return %1, %c0_i32, %arg0 : i32, i32, i32
  }
  func.func @transform_2(%arg0: i32, %arg1: i32, %arg2: memref<2xi32, #tpu.memory_space<smem>>, %arg3: memref<2xi32, #tpu.memory_space<smem>>, %arg4: memref<2xi32, #tpu.memory_space<smem>>) -> (i32, i32, i32) {
    %0 = arith.index_cast %arg1 : i32 to index
    %1 = memref.load %arg3[%0] : memref<2xi32, #tpu.memory_space<smem>>
    %c0_i32 = arith.constant 0 : i32
    %c0_i32_0 = arith.constant 0 : i32
    return %1, %c0_i32, %arg0 : i32, i32, i32
  }
  func.func @transform_3(%arg0: i32, %arg1: i32, %arg2: memref<2xi32, #tpu.memory_space<smem>>, %arg3: memref<2xi32, #tpu.memory_space<smem>>, %arg4: memref<2xi32, #tpu.memory_space<smem>>) -> (i32, i32) {
    %c0_i32 = arith.constant 0 : i32
    return %arg1, %arg0 : i32, i32
  }
}

</mosaic_0001>

<bundles_post_ra>
// kernel: custom-call.3
= control target key start
LH: loop header
LB: loop body
LE: loop exit
PB: predicated region body
PF: predicated region fallthrough
CT: control target
= control target key end

     0   :  { %s6_s0 = inlined_call_operand.vmem [shape: u32[2], index: 0, kind: output, shape index: {}]  }

// kernel: category_specific_linear.1
= control target key start
LH: loop header
LB: loop body
LE: loop exit
PB: predicated region body
PF: predicated region fallthrough
CT: control target
= control target key end

     0   :  { %s652_s27 = smov [#allocation3]   ;;  %s653_s28 = smov [#allocation4]   ;;  %s749_s0 = inlined_call_operand.vmem [shape: s32[2], index: 0, kind: input, shape index: {}]   ;;  %s750_s3 = inlined_call_operand.vmem [shape: bf16[32,128], index: 3, kind: input, shape index: {}]   ;;  %s751_s4 = inlined_call_operand.vmem [shape: bf16[3,128,128], index: 4, kind: input, shape index: {}]   ;;  %s752_s5 = inlined_call_operand.vmem [shape: f32[3,1,128], index: 5, kind: input, shape index: {}]   ;;  %s753_s6 = inlined_call_operand.vmem [shape: f32[32,128], index: 6, kind: output, shape index: {}]   ;;  %s754_s1 = inlined_call_operand.vmem [shape: s32[2], index: 1, kind: input, shape index: {}]   ;;  %s755_s2 = inlined_call_operand.vmem [shape: s32[2], index: 2, kind: input, shape index: {}]  }
   0x1   :  { %s12_s23 = sshll.u32 %s749_s0, 4  ;;  %s17_s26 = sshll.u32 %s754_s1, 4  ;;  %s13_s23 = int_to_ptr.vmem [resolvable:$true] %s12_s23  ;;  %s18_s26 = int_to_ptr.vmem [resolvable:$true] %s17_s26 }
   0x2   :  { %15 = dma.vmem_to_smem %s13_s23, 16, %s652_s27, [#allocation2] }
   0x3   :  { %20 = dma.vmem_to_smem %s18_s26, 16, %s653_s28, [#allocation2] }
   0x4   :  { %s22_s7 = sshll.u32 %s755_s2, 4  ;;  %s654_s8 = smov [#allocation5]   ;;  %s23_s7 = int_to_ptr.vmem [resolvable:$true] %s22_s7 }
   0x5   :  { %25 = dma.vmem_to_smem %s23_s7, 16, %s654_s8, [#allocation2] }
   0x6   :  { %638 = dma.done.wait [#allocation2], 48 }
   0x7   :  { %639 = vsyncadd [#allocation2], 4294967248 }
   0x8   :  { %28 = sfence }
   0x9   :  { %s700_s0 = smov 0   ;;  %s702_s9 = smov 0  }
   0xa   :  { %s704_s1 = smov 0  }
   0xb LB: > { %s43_s2 = sadd.s32 1, %s646_s9  ;;  %p504_p0 = scmp.ge.s32.totalorder %s650_s1, 1  ;;  %s650_s1 = sphi %s704_s1, %s34_s1   ;;  %s646_s9 = sphi %s702_s9, %s757_s9   ;;  %s642_s0 = sphi %s700_s0, %s756_s0  }
   0xc   : > { %p44_p1 = scmp.ge.s32.totalorder %s43_s2, 2  ;;  %p213_p2 = scmp.lt.s32.totalorder %s650_s1, 3 }
   0xe   : > { %s759_s2 = smov (%p44_p1, %s43_s2), 0  ;;  %p214_p3 = pnand %p504_p0, %p213_p2 }
   0xf   : > { %s257_s10 = sld [smem:[#allocation3 + %s642_s0]] (!%p214_p3)  ;;  %s509_s11 = sshll.u32 (!%p214_p3), %s642_s0, 1 }
  0x10   : > { %217 = sbr.rel (%p214_p3) target bundleno = 214 (0xd6), region = 32  ;;  %s265_s12 = sld [smem:[#allocation4 + %s642_s0]] (!%p214_p3) }
  0x11   : > { %p284_p4 = scmp.lt.s32.totalorder (!%p214_p3), %s509_s11, 3  ;;  %s275_s13 = sld [smem:[#allocation4 + %s642_s0]] (!%p214_p3) }
  0x12   : > { %s718_s14 = sld [smem:[#allocation5 + %s642_s0]] (!%p214_p3) }
  0x15   : > { %s761_s11 = smov (!%p284_p4, %s509_s11), 3  ;;  %s505_s16 = sshll.u32 %s257_s10, 1 }
  0x16   : > { %s510_s15 = sshll.u32 %s761_s11, 3  ;;  %p259_p5 = scmp.lt.s32.totalorder %s505_s16, 3 }
  0x17   : > { %s723_s19 = scalar_lea.vmem %s753_s6, %s510_s15  ;;  %p266_p6 = scmp.lt.s32.totalorder %s265_s12, 2 }
  0x18   : > { %p276_p7 = scmp.lt.s32.totalorder %s275_s13, 2  ;;  %s763_s16 = smov (!%p259_p5, %s505_s16), 3 }
  0x19   : > { %s765_s12 = smov (!%p266_p6, %s265_s12), 2  ;;  %s506_s20 = sshll.u32 %s763_s16, 2 }
  0x1a   : > { %s262_s23 = scalar_lea.vmem %s750_s3, %s506_s20  ;;  %s551_s24 = sshll.u32 %s765_s12, 6 }
  0x1b   : > { %s273_s27 = scalar_lea.vmem %s751_s4, %s551_s24  ;;  %s767_s13 = smov (!%p276_p7, %s275_s13), 2 }
  0x1c   : > { %s281_s30 = scalar_lea.vmem %s752_s5, %s767_s13  ;;  %p511_p8 = scmp.le.s32.totalorder %s718_s14, 0 }
  0x1e   : > { %296 = sbr.rel (%p511_p8) target bundleno = 204 (0xcc), region = 36 }
  0x23   : > { %v560_v0 = vld [vmem:[%s273_s27 + $0x38] sm:$0xff]  ;;  %v559_v1 = vld [vmem:[%s273_s27 + $0x30] sm:$0xff]  ;;  %v558_v2 = vld [vmem:[%s273_s27 + $0x28] sm:$0xff] }
  0x24   : > { %373 = vmatpush.bf16.msra.mxu0 %v560_v0  ;;  %v557_v3 = vld [vmem:[%s273_s27 + $0x20] sm:$0xff]  ;;  %v556_v4 = vld [vmem:[%s273_s27 + $0x18] sm:$0xff]  ;;  %v555_v5 = vld [vmem:[%s273_s27 + $0x10] sm:$0xff] }
  0x25   : > { %v554_v6 = vld [vmem:[%s273_s27 + $0x8] sm:$0xff]  ;;  %v553_v7 = vld [vmem:[%s273_s27] sm:$0xff] }
  0x26   : > { %v552_v8 = vld [vmem:[%s262_s23] sm:$0xff] }
  0x27   : > { %v589_v9 = vld [vmem:[%s281_s30] ss:$0 sm:$0xff] }
  0x28   : > { %374 = vmatpush.bf16.msra.mxu0 %v559_v1 }
  0x2c   : > { %375 = vmatpush.bf16.msra.mxu0 %v558_v2 }
  0x30   : > { %376 = vmatpush.bf16.msra.mxu0 %v557_v3 }
  0x34   : > { %377 = vmatpush.bf16.msra.mxu0 %v556_v4 }
  0x38   : > { %378 = vmatpush.bf16.msra.mxu0 %v555_v5 }
  0x3c   : > { %379 = vmatpush.bf16.msra.mxu0 %v554_v6 }
  0x40   : > { %380 = vmatpush.bf16.msra.mxu0 %v553_v7 }
  0x43   : > { %381 = vmatmul.bf16.vlgmr.msra.gmra.mxu0 %v552_v8 }
  0xc0   : > { %v382_v10 = vpop.f32.mrf.mxu0 }
  0xc1   : > { %v383_v11 = vadd.f32 %v589_v9, %v382_v10 }
  0xc3   : > { %387 = vst [vmem:[%s723_s19] sm:$0xff] %v383_v11 }
  0xc8   : > { %v384_v12 = vpop.f32.mrf.mxu0 }
  0xc9   : > { %v385_v13 = vadd.f32 %v589_v9, %v384_v12 }
  0xcb   : > { %388 = vst [vmem:[%s723_s19 + $0x8] sm:$0xff] %v385_v13 }
  0xcc PF: > { %p548_p9 = scmp.gt.s32.totalorder %s718_s14, 0 }
  0xce   : > { %392 = sbr.rel (%p548_p9) target bundleno = 214 (0xd6), region = 40 }
  0xd3   : > { %v655_v14 = vmov 0.0  }
  0xd4   : > { %393 = vst [vmem:[%s723_s19] sm:$0xff] %v655_v14 }
  0xd5   : > { %394 = vst [vmem:[%s723_s19 + $0x8] sm:$0xff] %v655_v14 }
  0xd6 PF: > { %s34_s1 = sadd.s32 1, %s650_s1   ;;  %s756_s0 = smov %s646_s9 }
  0xd7   : > { %p31_p10 = scmp.ge.s32.totalorder %s34_s1, 4   ;;  %s757_s9 = smov %s759_s2 }
  0xd9   :  { %33 = sbr.rel (!%p31_p10) target bundleno = 11 (0xb), region = 76 }

</bundles_post_ra>
